<compile_context>
chip_gen: v7x
topology: tpu7x:2x2x1
jax: 0.10.0
libtpu: 0.0.40
codegen_flags: <defaults>
</compile_context>

<pallas_src>
import functools

import jax
import jax.numpy as jnp
import numpy as np
from jax.experimental import pallas as pl
from jax.experimental.pallas import tpu as pltpu

_LANE = 128                     # TPU lane width (last dim of a vreg)
_SUBLANE = 8                    # f32 sublane count (2nd-to-last dim of a vreg)
_MAX_BLOCK_ROWS = 512           # measured sweet spot for mem-bound tiles
_VMEM_BUDGET_BYTES = 30 << 20   # tile-sizing budget used by the wrapper math
_VMEM_LIMIT_BYTES = 48 << 20    # explicit scoped-VMEM limit (safe on v5e/v6e/v7x)


def _round_up(n: int, m: int) -> int:
    return ((n + m - 1) // m) * m


def _make_mlp_kernel(num_layers: int, activate_output: bool, compute_dtype):
    """Fused MLP kernel: all linear layers + activations in one grid step."""

    def kernel(*refs):
        # refs = (x_ref, w0, b0, w1, b1, ..., w_{L-1}, b_{L-1}, o_ref)
        x_ref = refs[0]
        param_refs = refs[1:1 + 2 * num_layers]
        o_ref = refs[-1]

        h = x_ref[...]
        if h.dtype != compute_dtype:
            h = h.astype(compute_dtype)           # bf16 MXU operands if requested
        for i in range(num_layers):
            w = param_refs[2 * i][...]            # (d_in_i, d_out_i), compute_dtype
            b = param_refs[2 * i + 1][...]        # (1, d_out_i), float32
            acc = jnp.dot(h, w, preferred_element_type=jnp.float32)   # MXU, f32 acc
            acc = acc + b
            if i < num_layers - 1:
                acc = jnp.maximum(acc, 0.0)       # F.relu (VPU, f32)
                h = acc.astype(compute_dtype)     # keep MXU operands narrow
            else:
                if activate_output:
                    # torch.sigmoid.  (For very wide outputs, exp(-x) +
                    # pl.reciprocal(..., approx=True) keeps the divide on the EUP;
                    # with a narrow output it makes no measurable difference.)
                    acc = jax.nn.sigmoid(acc)
                h = acc
        o_ref[...] = h.astype(o_ref.dtype)

    return kernel


def init_mlp_params(key, in_shape, out_shape, hidden_sizes, dtype=jnp.float32):
    """nn.Linear-style init (uniform(-1/sqrt(fan_in), 1/sqrt(fan_in))).

    Weights are returned already transposed to (in_features, out_features);
    biases as (1, out_features).
    """
    sizes = [int(np.prod(in_shape))] + list(hidden_sizes) + [int(np.prod(out_shape))]
    params = []
    for fan_in, fan_out in zip(sizes[:-1], sizes[1:]):
        key, kw, kb = jax.random.split(key, 3)
        bound = 1.0 / np.sqrt(fan_in)
        w = jax.random.uniform(kw, (fan_in, fan_out), dtype, -bound, bound)
        b = jax.random.uniform(kb, (1, fan_out), dtype, -bound, bound)
        params.append((w, b))
    return params


@functools.partial(
    jax.jit,
    static_argnames=("in_shape", "out_shape", "activate_output", "compute_dtype"))
def mlp_forward(x, params, *, in_shape, out_shape, activate_output=False,
                compute_dtype=None):
    """Runs the MLP forward pass with a single fused Pallas kernel.

    Args:
      x: array of shape (B, *in_shape).
      params: list of (W, b) pairs, W: (in_i, out_i), b: (1, out_i).
      compute_dtype: optional MXU operand dtype (e.g. jnp.bfloat16 on v6e/v7x);
        accumulation is always float32.
    Returns:
      array of shape (B, *out_shape).
    """
    in_shape = tuple(in_shape)
    out_shape = tuple(out_shape)
    if x.shape[1:] != in_shape:
        raise ValueError(f"Expected inputs of shape {in_shape}, got {x.shape[1:]}.")

    in_feat = int(np.prod(in_shape))
    out_feat = int(np.prod(out_shape))
    B = int(x.shape[0])
    num_layers = len(params)
    if compute_dtype is None:
        compute_dtype = np.dtype(params[0][0].dtype)
    else:
        compute_dtype = np.dtype(compute_dtype)

    # ---- kernel-side feature widths: lane-pad input & hidden dims to 128;
    #      emit the output at its TRUE width (no inflated writeback / slice) ----
    dims = [in_feat] + [int(w.shape[1]) for (w, _) in params]
    dims_k = [_round_up(d, _LANE) for d in dims]
    dims_k[-1] = out_feat
    in_feat_k = dims_k[0]
    max_width = max(dims_k)

    # ---- pad / cast parameters (zero padding is numerically exact) ----
    flat_params = []
    param_specs = []
    for li, (w, b) in enumerate(params):
        w_k = jnp.pad(w, ((0, dims_k[li] - w.shape[0]),
                          (0, dims_k[li + 1] - w.shape[1]))).astype(compute_dtype)
        b_k = jnp.pad(b.reshape(1, -1),
                      ((0, 0), (0, dims_k[li + 1] - b.shape[-1]))).astype(jnp.float32)
        flat_params += [w_k, b_k]
        # Grid-invariant (constant index_map) -> fetched once; single-buffer them
        # to halve parameter VMEM (matters on v7x's 64 MiB VMEM for big hiddens).
        param_specs.append(
            pl.BlockSpec(w_k.shape, lambda i: (0, 0), pipeline_mode=pl.Buffered(1)))
        param_specs.append(
            pl.BlockSpec(b_k.shape, lambda i: (0, 0), pipeline_mode=pl.Buffered(1)))

    # ---- x: flatten; lane-pad ONLY if in_feat is not a multiple of 128 ----
    x2d = x.reshape(B, in_feat)
    if in_feat_k != in_feat:
        x2d = jnp.pad(x2d, ((0, 0), (0, in_feat_k - in_feat)))

    # ---- batch tile choice: balance tiles, feed both v7x TCs, respect VMEM ----
    x_bytes = x2d.dtype.itemsize
    out_bytes = x.dtype.itemsize
    operand_bytes = compute_dtype.itemsize
    param_vmem = sum(int(a.size) * a.dtype.itemsize for a in flat_params)
    per_row_bytes = (2 * in_feat_k * x_bytes            # double-buffered x tile
                     + 2 * out_feat * out_bytes          # double-buffered out tile
                     + max_width * (8 + operand_bytes))  # f32 acc/temp + narrow act
    # Count params at 2x for headroom even though they are single-buffered.
    avail = _VMEM_BUDGET_BYTES - 2 * param_vmem
    rows_by_vmem = max(_SUBLANE, avail // per_row_bytes)
    max_block = max(_SUBLANE,
                    (min(_MAX_BLOCK_ROWS, rows_by_vmem) // _SUBLANE) * _SUBLANE)

    if B <= _SUBLANE:
        block_rows = B                       # one full-extent tile, no padding
    else:
        # >= 2 tiles so both v7x TensorCores get work; sized to balance tiles so
        # the ragged (masked) tail of the last tile stays tiny.
        num_tiles = max(pl.cdiv(B, max_block), 2)
        block_rows = min(max_block, _round_up(pl.cdiv(B, num_tiles), _SUBLANE))
    grid = (pl.cdiv(B, block_rows),)

    kernel = _make_mlp_kernel(num_layers, activate_output, compute_dtype)

    cost = pl.CostEstimate(
        flops=2 * B * sum(dims_k[i] * dims_k[i + 1] for i in range(num_layers)),
        transcendentals=(B * out_feat) if activate_output else 0,
        bytes_accessed=(B * in_feat_k * x_bytes + B * out_feat * out_bytes
                        + param_vmem),
    )

    out = pl.pallas_call(
        kernel,
        out_shape=jax.ShapeDtypeStruct((B, out_feat), x.dtype),
        grid_spec=pltpu.PrefetchScalarGridSpec(
            num_scalar_prefetch=0,
            grid=grid,
            in_specs=[pl.BlockSpec((block_rows, in_feat_k), lambda i: (i, 0))]
                     + param_specs,
            out_specs=pl.BlockSpec((block_rows, out_feat), lambda i: (i, 0)),
        ),
        compiler_params=pltpu.CompilerParams(
            dimension_semantics=("parallel",),       # shard batch tiles across TCs
            vmem_limit_bytes=_VMEM_LIMIT_BYTES,
        ),
        cost_estimate=cost,
    )(x2d, *flat_params)

    # Zero-copy reshape — no batch / lane padding to slice off.
    return out.reshape(B, *out_shape)


def mlp_reference(x, params, *, in_shape, out_shape, activate_output=False,
                  compute_dtype=None):
    """Plain-JAX reference matching the PyTorch forward (and the kernel's casts)."""
    B = x.shape[0]
    cd = (np.dtype(compute_dtype) if compute_dtype is not None
          else np.dtype(params[0][0].dtype))
    h = x.reshape(B, int(np.prod(in_shape))).astype(cd)
    for i, (w, b) in enumerate(params):
        acc = jnp.dot(h, w.astype(cd), preferred_element_type=jnp.float32)
        acc = acc + b.reshape(1, -1).astype(jnp.float32)
        if i < len(params) - 1:
            acc = jnp.maximum(acc, 0.0)
            h = acc.astype(cd)
        else:
            if activate_output:
                acc = jax.nn.sigmoid(acc)
            h = acc
    return h.astype(x.dtype).reshape(B, *out_shape)


if __name__ == "__main__":
    key = jax.random.PRNGKey(0)

    in_shape = (4, 16, 16)        # small NCHW image flattened by the MLP
    out_shape = (8,)
    hidden_sizes = [32, 64]

    kp, kx1, kx2, kx3 = jax.random.split(key, 4)
    params = init_mlp_params(kp, in_shape, out_shape, hidden_sizes)

    # --- test 1: module default (tiny batch, single full-extent tile) ---
    x1 = jax.random.normal(kx1, (2, *in_shape), jnp.float32)
    y1 = jax.block_until_ready(
        mlp_forward(x1, params, in_shape=in_shape, out_shape=out_shape,
                    activate_output=False))
    r1 = mlp_reference(x1, params, in_shape=in_shape, out_shape=out_shape,
                       activate_output=False)
    assert y1.shape == (2, *out_shape)
    np.testing.assert_allclose(np.asarray(y1), np.asarray(r1), rtol=1e-5, atol=1e-5)

    # --- test 2: larger ragged batch (600 -> two 304-row tiles, masked tail)
    #             with the sigmoid output activation ---
    x2 = jax.random.normal(kx2, (600, *in_shape), jnp.float32)
    y2 = jax.block_until_ready(
        mlp_forward(x2, params, in_shape=in_shape, out_shape=out_shape,
                    activate_output=True))
    r2 = mlp_reference(x2, params, in_shape=in_shape, out_shape=out_shape,
                       activate_output=True)
    assert y2.shape == (600, *out_shape)
    np.testing.assert_allclose(np.asarray(y2), np.asarray(r2), rtol=1e-5, atol=1e-5)

    # --- test 3: bf16 operand path (f32 accumulation) for the v6e/v7x MXU ---
    x3 = jax.random.normal(kx3, (64, *in_shape), jnp.float32)
    y3 = jax.block_until_ready(
        mlp_forward(x3, params, in_shape=in_shape, out_shape=out_shape,
                    activate_output=False, compute_dtype=jnp.bfloat16))
    r3 = mlp_reference(x3, params, in_shape=in_shape, out_shape=out_shape,
                       activate_output=False, compute_dtype=jnp.bfloat16)
    np.testing.assert_allclose(np.asarray(y3), np.asarray(r3), rtol=1e-2, atol=1e-2)

    print("KERNEL_OK")
</pallas_src>

<mosaic_0001>
module attributes {stable_mosaic.version = 11 : i64} {
  func.func @kernel(%arg0: i32, %arg1: memref<2x1024xf32, #tpu.memory_space<vmem>>, %arg2: memref<1024x128xf32, #tpu.memory_space<vmem>>, %arg3: memref<1x128xf32, #tpu.memory_space<vmem>>, %arg4: memref<128x128xf32, #tpu.memory_space<vmem>>, %arg5: memref<1x128xf32, #tpu.memory_space<vmem>>, %arg6: memref<128x8xf32, #tpu.memory_space<vmem>>, %arg7: memref<1x8xf32, #tpu.memory_space<vmem>>, %arg8: memref<2x8xf32, #tpu.memory_space<vmem>>) attributes {dimension_semantics = [#tpu.dimension_semantics<parallel>], iteration_bounds = array<i64: 1>, scalar_prefetch = 0 : i64, scratch_operands = 0 : i64, tpu.core_type = #tpu.core_type<tc>, window_params = [{transform_indices = @transform_0, window_bounds = array<i64: 2, 1024>}, {pipeline_mode = #tpu.pipeline_mode<synchronous>, transform_indices = @transform_1, window_bounds = array<i64: 1024, 128>}, {pipeline_mode = #tpu.pipeline_mode<synchronous>, transform_indices = @transform_2, window_bounds = array<i64: 1, 128>}, {pipeline_mode = #tpu.pipeline_mode<synchronous>, transform_indices = @transform_3, window_bounds = array<i64: 128, 128>}, {pipeline_mode = #tpu.pipeline_mode<synchronous>, transform_indices = @transform_4, window_bounds = array<i64: 1, 128>}, {pipeline_mode = #tpu.pipeline_mode<synchronous>, transform_indices = @transform_5, window_bounds = array<i64: 128, 8>}, {pipeline_mode = #tpu.pipeline_mode<synchronous>, transform_indices = @transform_6, window_bounds = array<i64: 1, 8>}, {transform_indices = @transform_7, window_bounds = array<i64: 2, 8>}]} {
    %c0 = arith.constant 0 : index
    %c0_0 = arith.constant 0 : index
    %0 = vector.load %arg1[%c0, %c0_0] : memref<2x1024xf32, #tpu.memory_space<vmem>>, vector<2x1024xf32>
    %c0_1 = arith.constant 0 : index
    %c0_2 = arith.constant 0 : index
    %1 = vector.load %arg2[%c0_1, %c0_2] : memref<1024x128xf32, #tpu.memory_space<vmem>>, vector<1024x128xf32>
    %c0_3 = arith.constant 0 : index
    %c0_4 = arith.constant 0 : index
    %2 = vector.load %arg3[%c0_3, %c0_4] : memref<1x128xf32, #tpu.memory_space<vmem>>, vector<1x128xf32>
    %cst = arith.constant dense<0.000000e+00> : vector<2x128xf32>
    %3 = tpu.matmul %0, %1, %cst {dimension_numbers = #tpu.dot_dimension_numbers<[1], [0], [0], [1], [0, 0, 1, 1], [], []>} : vector<2x1024xf32>, vector<1024x128xf32>, vector<2x128xf32> -> vector<2x128xf32>
    %4 = vector.broadcast %2 : vector<1x128xf32> to vector<2x128xf32>
    %5 = arith.addf %3, %4 : vector<2x128xf32>
    %cst_5 = arith.constant 0.000000e+00 : f32
    %6 = vector.broadcast %cst_5 : f32 to vector<2x128xf32>
    %7 = arith.maximumf %5, %6 : vector<2x128xf32>
    %c0_6 = arith.constant 0 : index
    %c0_7 = arith.constant 0 : index
    %8 = vector.load %arg4[%c0_6, %c0_7] : memref<128x128xf32, #tpu.memory_space<vmem>>, vector<128x128xf32>
    %c0_8 = arith.constant 0 : index
    %c0_9 = arith.constant 0 : index
    %9 = vector.load %arg5[%c0_8, %c0_9] : memref<1x128xf32, #tpu.memory_space<vmem>>, vector<1x128xf32>
    %cst_10 = arith.constant dense<0.000000e+00> : vector<2x128xf32>
    %10 = tpu.matmul %7, %8, %cst_10 {dimension_numbers = #tpu.dot_dimension_numbers<[1], [0], [0], [1], [0, 0, 1, 1], [], []>} : vector<2x128xf32>, vector<128x128xf32>, vector<2x128xf32> -> vector<2x128xf32>
    %11 = vector.broadcast %9 : vector<1x128xf32> to vector<2x128xf32>
    %12 = arith.addf %10, %11 : vector<2x128xf32>
    %cst_11 = arith.constant 0.000000e+00 : f32
    %13 = vector.broadcast %cst_11 : f32 to vector<2x128xf32>
    %14 = arith.maximumf %12, %13 : vector<2x128xf32>
    %c0_12 = arith.constant 0 : index
    %c0_13 = arith.constant 0 : index
    %15 = vector.load %arg6[%c0_12, %c0_13] : memref<128x8xf32, #tpu.memory_space<vmem>>, vector<128x8xf32>
    %c0_14 = arith.constant 0 : index
    %c0_15 = arith.constant 0 : index
    %16 = vector.load %arg7[%c0_14, %c0_15] : memref<1x8xf32, #tpu.memory_space<vmem>>, vector<1x8xf32>
    %cst_16 = arith.constant dense<0.000000e+00> : vector<2x8xf32>
    %17 = tpu.matmul %14, %15, %cst_16 {dimension_numbers = #tpu.dot_dimension_numbers<[1], [0], [0], [1], [0, 0, 1, 1], [], []>} : vector<2x128xf32>, vector<128x8xf32>, vector<2x8xf32> -> vector<2x8xf32>
    %18 = vector.broadcast %16 : vector<1x8xf32> to vector<2x8xf32>
    %19 = arith.addf %17, %18 : vector<2x8xf32>
    %c0_17 = arith.constant 0 : index
    %c0_18 = arith.constant 0 : index
    %20 = vector.load %arg8[%c0_17, %c0_18] : memref<2x8xf32, #tpu.memory_space<vmem>>, vector<2x8xf32>
    tpu.vector_store %arg8[%c0_17, %c0_18], %19 {strides = array<i32>} : memref<2x8xf32, #tpu.memory_space<vmem>>, vector<2x8xf32>,
    return
  }
  func.func @transform_0(%arg0: i32) -> (i32, i32) {
    %c0_i32 = arith.constant 0 : i32
    %c0_i32_0 = arith.constant 0 : i32
    return %arg0, %c0_i32 : i32, i32
  }
  func.func @transform_1(%arg0: i32) -> (i32, i32) {
    %c0_i32 = arith.constant 0 : i32
    %c0_i32_0 = arith.constant 0 : i32
    %c0_i32_1 = arith.constant 0 : i32
    return %c0_i32, %c0_i32_0 : i32, i32
  }
  func.func @transform_2(%arg0: i32) -> (i32, i32) {
    %c0_i32 = arith.constant 0 : i32
    %c0_i32_0 = arith.constant 0 : i32
    %c0_i32_1 = arith.constant 0 : i32
    return %c0_i32, %c0_i32_0 : i32, i32
  }
  func.func @transform_3(%arg0: i32) -> (i32, i32) {
    %c0_i32 = arith.constant 0 : i32
    %c0_i32_0 = arith.constant 0 : i32
    %c0_i32_1 = arith.constant 0 : i32
    return %c0_i32, %c0_i32_0 : i32, i32
  }
  func.func @transform_4(%arg0: i32) -> (i32, i32) {
    %c0_i32 = arith.constant 0 : i32
    %c0_i32_0 = arith.constant 0 : i32
    %c0_i32_1 = arith.constant 0 : i32
    return %c0_i32, %c0_i32_0 : i32, i32
  }
  func.func @transform_5(%arg0: i32) -> (i32, i32) {
    %c0_i32 = arith.constant 0 : i32
    %c0_i32_0 = arith.constant 0 : i32
    %c0_i32_1 = arith.constant 0 : i32
    return %c0_i32, %c0_i32_0 : i32, i32
  }
  func.func @transform_6(%arg0: i32) -> (i32, i32) {
    %c0_i32 = arith.constant 0 : i32
    %c0_i32_0 = arith.constant 0 : i32
    %c0_i32_1 = arith.constant 0 : i32
    return %c0_i32, %c0_i32_0 : i32, i32
  }
  func.func @transform_7(%arg0: i32) -> (i32, i32) {
    %c0_i32 = arith.constant 0 : i32
    %c0_i32_0 = arith.constant 0 : i32
    return %arg0, %c0_i32 : i32, i32
  }
}

</mosaic_0001>

<bundles_post_ra>
// kernel: mlp_forward.1
= control target key start
LH: loop header
LB: loop body
LE: loop exit
PB: predicated region body
PF: predicated region fallthrough
CT: control target
= control target key end

     0   :  { %v1146_v47 = vmov 1983009808   ;;  %v170_v49 = vlaneseq  ;;  %s1725_s0 = inlined_call_operand.vmem [shape: f32[2,1024], index: 0, kind: input, shape index: {}]   ;;  %s1726_s1 = inlined_call_operand.vmem [shape: f32[1024,128], index: 1, kind: input, shape index: {}]   ;;  %s1727_s2 = inlined_call_operand.vmem [shape: f32[1,128], index: 2, kind: input, shape index: {}]   ;;  %s1728_s3 = inlined_call_operand.vmem [shape: f32[128,128], index: 3, kind: input, shape index: {}]   ;;  %s1729_s4 = inlined_call_operand.vmem [shape: f32[1,128], index: 4, kind: input, shape index: {}]   ;;  %s1730_s5 = inlined_call_operand.vmem [shape: f32[128,8], index: 5, kind: input, shape index: {}]   ;;  %s1731_s6 = inlined_call_operand.vmem [shape: f32[1,8], index: 6, kind: input, shape index: {}]   ;;  %s1732_s7 = inlined_call_operand.hbm [shape: f32[2,8], index: 7, kind: output, shape index: {}]  }
   0x1   :  { %v45_v0 = vld [vmem:[%s1726_s1 + $0x80] sm:$0xff]  ;;  %v46_v1 = vld [vmem:[%s1726_s1 + $0x88] sm:$0xff]  ;;  %v47_v11 = vld [vmem:[%s1726_s1 + $0x90] sm:$0xff]  ;;  %v168_v48 = vunpack.c.l.s4 %v1146_v47 }
   0x2   :  { %v29_v2 = vld [vmem:[%s1726_s1] sm:$0xff]  ;;  %v939_v3 = vpack.c.bf16 %v46_v1, %v45_v0  ;;  %v30_v4 = vld [vmem:[%s1726_s1 + $0x8] sm:$0xff]  ;;  %v48_v13 = vld [vmem:[%s1726_s1 + $0x98] sm:$0xff]  ;;  %v171_v0 = vshrl.u32 %v170_v49, 7 }
   0x3   :  { %v77_v5 = vld [vmem:[%s1726_s1 + $0x180] sm:$0xff]  ;;  %v78_v6 = vld [vmem:[%s1726_s1 + $0x188] sm:$0xff]  ;;  %v941_v7 = vpack.c.bf16 %v30_v4, %v29_v2  ;;  %v31_v14 = vld [vmem:[%s1726_s1 + $0x10] sm:$0xff]  ;;  %v943_v16 = vpack.c.bf16 %v48_v13, %v47_v11  ;;  %v169_v63 = vunpack.c.0.s8 %v168_v48 }
   0x4   :  { %v971_v8 = vpack.c.bf16 %v78_v6, %v77_v5  ;;  %v61_v9 = vld [vmem:[%s1726_s1 + $0x100] sm:$0xff]  ;;  %v62_v10 = vld [vmem:[%s1726_s1 + $0x108] sm:$0xff]  ;;  %940 = vmatprep.subr.bf16.mxu0 %v939_v3  ;;  %v32_v15 = vld [vmem:[%s1726_s1 + $0x18] sm:$0xff] }
   0x5   :  { %v973_v12 = vpack.c.bf16 %v62_v10, %v61_v9  ;;  %942 = vmatpush3.bf16.msra.mxu0 %v941_v7  ;;  %v945_v17 = vpack.c.bf16 %v32_v15, %v31_v14  ;;  %v79_v18 = vld [vmem:[%s1726_s1 + $0x190] sm:$0xff]  ;;  %v80_v19 = vld [vmem:[%s1726_s1 + $0x198] sm:$0xff]  ;;  %v49_v23 = vld [vmem:[%s1726_s1 + $0xa0] sm:$0xff]  ;;  %v1341_v13 = vsub.s32 %v169_v63, %v171_v0 }
   0x6   :  { %972 = vmatprep.subr.bf16.mxu1 %v971_v8  ;;  %v63_v20 = vld [vmem:[%s1726_s1 + $0x110] sm:$0xff]  ;;  %v975_v21 = vpack.c.bf16 %v80_v19, %v79_v18  ;;  %v64_v22 = vld [vmem:[%s1726_s1 + $0x118] sm:$0xff]  ;;  %v50_v24 = vld [vmem:[%s1726_s1 + $0xa8] sm:$0xff]  ;;  %944 = vmatprep.subr.bf16.mxu0 %v943_v16 }
   0x7   :  { %974 = vmatpush3.bf16.msra.mxu1 %v973_v12  ;;  %v977_v25 = vpack.c.bf16 %v64_v22, %v63_v20  ;;  %v947_v26 = vpack.c.bf16 %v50_v24, %v49_v23  ;;  %v33_v27 = vld [vmem:[%s1726_s1 + $0x20] sm:$0xff]  ;;  %v34_v28 = vld [vmem:[%s1726_s1 + $0x28] sm:$0xff]  ;;  %v51_v35 = vld [vmem:[%s1726_s1 + $0xb0] sm:$0xff] }
   0x8   :  { %v81_v29 = vld [vmem:[%s1726_s1 + $0x1a0] sm:$0xff]  ;;  %976 = vmatprep.subr.bf16.mxu1 %v975_v21  ;;  %v82_v30 = vld [vmem:[%s1726_s1 + $0x1a8] sm:$0xff]  ;;  %v949_v33 = vpack.c.bf16 %v34_v28, %v33_v27  ;;  %v52_v36 = vld [vmem:[%s1726_s1 + $0xb8] sm:$0xff] }
   0x9   :  { %v65_v31 = vld [vmem:[%s1726_s1 + $0x120] sm:$0xff]  ;;  %v66_v32 = vld [vmem:[%s1726_s1 + $0x128] sm:$0xff]  ;;  %946 = vmatpush3.bf16.msra.mxu0 %v945_v17  ;;  %v979_v34 = vpack.c.bf16 %v82_v30, %v81_v29  ;;  %v35_v37 = vld [vmem:[%s1726_s1 + $0x30] sm:$0xff]  ;;  %v951_v39 = vpack.c.bf16 %v52_v36, %v51_v35 }
   0xa   :  { %948 = vmatprep.subr.bf16.mxu0 %v947_v26  ;;  %v981_v38 = vpack.c.bf16 %v66_v32, %v65_v31  ;;  %v36_v40 = vld [vmem:[%s1726_s1 + $0x38] sm:$0xff]  ;;  %v83_v41 = vld [vmem:[%s1726_s1 + $0x1b0] sm:$0xff]  ;;  %v53_v46 = vld [vmem:[%s1726_s1 + $0xc0] sm:$0xff] }
   0xb   :  { %978 = vmatpush3.bf16.msra.mxu1 %v977_v25  ;;  %v84_v42 = vld [vmem:[%s1726_s1 + $0x1b8] sm:$0xff]  ;;  %v67_v44 = vld [vmem:[%s1726_s1 + $0x130] sm:$0xff]  ;;  %v54_v50 = vld [vmem:[%s1726_s1 + $0xc8] sm:$0xff]  ;;  %v953_v51 = vpack.c.bf16 %v36_v40, %v35_v37 }
   0xc   :  { %980 = vmatprep.subr.bf16.mxu1 %v979_v34  ;;  %v983_v43 = vpack.c.bf16 %v84_v42, %v83_v41  ;;  %v68_v45 = vld [vmem:[%s1726_s1 + $0x138] sm:$0xff]  ;;  %v85_v52 = vld [vmem:[%s1726_s1 + $0x1c0] sm:$0xff]  ;;  %v86_v53 = vld [vmem:[%s1726_s1 + $0x1c8] sm:$0xff]  ;;  %v955_v55 = vpack.c.bf16 %v54_v50, %v53_v46 }
   0xd   :  { %950 = vmatpush3.bf16.msra.mxu0 %v949_v33  ;;  %v985_v54 = vpack.c.bf16 %v68_v45, %v67_v44  ;;  %v37_v56 = vld [vmem:[%s1726_s1 + $0x40] sm:$0xff]  ;;  %v38_v57 = vld [vmem:[%s1726_s1 + $0x48] sm:$0xff]  ;;  %v987_v59 = vpack.c.bf16 %v86_v53, %v85_v52  ;;  %v55_v61 = vld [vmem:[%s1726_s1 + $0xd0] sm:$0xff] }
   0xe   :  { %952 = vmatprep.subr.bf16.mxu0 %v951_v39  ;;  %v69_v58 = vld [vmem:[%s1726_s1 + $0x140] sm:$0xff]  ;;  %v70_v60 = vld [vmem:[%s1726_s1 + $0x148] sm:$0xff]  ;;  %v56_v62 = vld [vmem:[%s1726_s1 + $0xd8] sm:$0xff]  ;;  %v957_v3 = vpack.c.bf16 %v38_v57, %v37_v56 }
   0xf   :  { %982 = vmatpush3.bf16.msra.mxu1 %v981_v38  ;;  %v87_v1 = vld [vmem:[%s1726_s1 + $0x1d0] sm:$0xff]  ;;  %v88_v2 = vld [vmem:[%s1726_s1 + $0x1d8] sm:$0xff]  ;;  %v989_v4 = vpack.c.bf16 %v70_v60, %v69_v58  ;;  %v959_v5 = vpack.c.bf16 %v56_v62, %v55_v61  ;;  %v57_v11 = vld [vmem:[%s1726_s1 + $0xe0] sm:$0xff] }
  0x10   :  { %984 = vmatprep.subr.bf16.mxu1 %v983_v43  ;;  %v39_v6 = vld [vmem:[%s1726_s1 + $0x50] sm:$0xff]  ;;  %v40_v7 = vld [vmem:[%s1726_s1 + $0x58] sm:$0xff]  ;;  %v991_v9 = vpack.c.bf16 %v88_v2, %v87_v1  ;;  %v58_v12 = vld [vmem:[%s1726_s1 + $0xe8] sm:$0xff] }
  0x11   :  { %954 = vmatpush3.bf16.msra.mxu0 %v953_v51  ;;  %v71_v8 = vld [vmem:[%s1726_s1 + $0x150] sm:$0xff]  ;;  %v72_v10 = vld [vmem:[%s1726_s1 + $0x158] sm:$0xff]  ;;  %v89_v14 = vld [vmem:[%s1726_s1 + $0x1e0] sm:$0xff]  ;;  %v961_v16 = vpack.c.bf16 %v40_v7, %v39_v6  ;;  %v963_v19 = vpack.c.bf16 %v58_v12, %v57_v11 }
  0x12   :  { %956 = vmatprep.subr.bf16.mxu0 %v955_v55  ;;  %v90_v15 = vld [vmem:[%s1726_s1 + $0x1e8] sm:$0xff]  ;;  %v41_v17 = vld [vmem:[%s1726_s1 + $0x60] sm:$0xff]  ;;  %v993_v18 = vpack.c.bf16 %v72_v10, %v71_v8  ;;  %v59_v25 = vld [vmem:[%s1726_s1 + $0xf0] sm:$0xff] }
  0x13   :  { %986 = vmatpush3.bf16.msra.mxu1 %v985_v54  ;;  %v42_v20 = vld [vmem:[%s1726_s1 + $0x68] sm:$0xff]  ;;  %v73_v21 = vld [vmem:[%s1726_s1 + $0x160] sm:$0xff]  ;;  %v995_v23 = vpack.c.bf16 %v90_v15, %v89_v14  ;;  %v60_v26 = vld [vmem:[%s1726_s1 + $0xf8] sm:$0xff] }
  0x14   :  { %988 = vmatprep.subr.bf16.mxu1 %v987_v59  ;;  %v27_v22 = vld [vmem:[%s1725_s0] sm:$0xff]  ;;  %v74_v24 = vld [vmem:[%s1726_s1 + $0x168] sm:$0xff]  ;;  %v91_v29 = vld [vmem:[%s1726_s1 + $0x1f0] sm:$0xff]  ;;  %v965_v31 = vpack.c.bf16 %v42_v20, %v41_v17  ;;  %v967_v35 = vpack.c.bf16 %v60_v26, %v59_v25 }
  0x15   :  { %958 = vmatpush3.bf16.msra.mxu0 %v957_v3  ;;  %v173_v27 = vrot.slane %v27_v22, %v1341_v13  ;;  %v166_v28 = vcombine.high %v27_v22, %v27_v22  ;;  %v92_v30 = vld [vmem:[%s1726_s1 + $0x1f8] sm:$0xff]  ;;  %v997_v34 = vpack.c.bf16 %v74_v24, %v73_v21  ;;  %v43_v36 = vld [vmem:[%s1726_s1 + $0x70] sm:$0xff]  ;;  %v109_v41 = vld [vmem:[%s1726_s1 + $0x280] sm:$0xff] }
  0x16   :  { %960 = vmatprep.subr.bf16.mxu0 %v959_v5  ;;  %v44_v37 = vld [vmem:[%s1726_s1 + $0x78] sm:$0xff]  ;;  %v75_v38 = vld [vmem:[%s1726_s1 + $0x170] sm:$0xff]  ;;  %v999_v39 = vpack.c.bf16 %v92_v30, %v91_v29  ;;  %v110_v42 = vld [vmem:[%s1726_s1 + $0x288] sm:$0xff] }
  0x17   :  { %990 = vmatpush3.bf16.msra.mxu1 %v989_v4  ;;  %v181_v32 = vcombine.high %v173_v27, %v173_v27  ;;  %v180_v33 = vrot.slane %v166_v28, %v1341_v13  ;;  %v76_v40 = vld [vmem:[%s1726_s1 + $0x178] sm:$0xff]  ;;  %v141_v44 = vld [vmem:[%s1726_s1 + $0x380] sm:$0xff]  ;;  %v142_v45 = vld [vmem:[%s1726_s1 + $0x388] sm:$0xff]  ;;  %v969_v46 = vpack.c.bf16 %v44_v37, %v43_v36  ;;  %v1003_v48 = vpack.c.bf16 %v110_v42, %v109_v41 }
  0x18   :  { %992 = vmatprep.subr.bf16.mxu1 %v991_v9  ;;  %v1001_v47 = vpack.c.bf16 %v76_v40, %v75_v38  ;;  %v93_v49 = vld [vmem:[%s1726_s1 + $0x200] sm:$0xff]  ;;  %v94_v50 = vld [vmem:[%s1726_s1 + $0x208] sm:$0xff]  ;;  %v1035_v52 = vpack.c.bf16 %v142_v45, %v141_v44  ;;  %v111_v54 = vld [vmem:[%s1726_s1 + $0x290] sm:$0xff] }
  0x19   :  { %962 = vmatpush3.bf16.msra.mxu0 %v961_v16  ;;  %272 = vmatprep.mubr.f32.mxu0 %v181_v32  ;;  %v182_v43 = vcombine.high %v180_v33, %v180_v33  ;;  %v125_v51 = vld [vmem:[%s1726_s1 + $0x300] sm:$0xff]  ;;  %v126_v53 = vld [vmem:[%s1726_s1 + $0x308] sm:$0xff]  ;;  %v112_v55 = vld [vmem:[%s1726_s1 + $0x298] sm:$0xff]  ;;  %v1005_v58 = vpack.c.bf16 %v94_v50, %v93_v49 }
  0x1a   :  { %964 = vmatprep.subr.bf16.mxu0 %v963_v19  ;;  %v143_v56 = vld [vmem:[%s1726_s1 + $0x390] sm:$0xff]  ;;  %v144_v57 = vld [vmem:[%s1726_s1 + $0x398] sm:$0xff]  ;;  %v1037_v59 = vpack.c.bf16 %v126_v53, %v125_v51  ;;  %v1007_v60 = vpack.c.bf16 %v112_v55, %v111_v54  ;;  %v113_v2 = vld [vmem:[%s1726_s1 + $0x2a0] sm:$0xff] }
  0x1b   :  { %994 = vmatpush3.bf16.msra.mxu1 %v993_v18  ;;  %342 = vmatprep.mubr.f32.mxu1 %v182_v43  ;;  %v95_v61 = vld [vmem:[%s1726_s1 + $0x210] sm:$0xff]  ;;  %v96_v62 = vld [vmem:[%s1726_s1 + $0x218] sm:$0xff]  ;;  %v1039_v0 = vpack.c.bf16 %v144_v57, %v143_v56  ;;  %v114_v3 = vld [vmem:[%s1726_s1 + $0x2a8] sm:$0xff] }
  0x1c   :  { %996 = vmatprep.subr.bf16.mxu1 %v995_v23  ;;  %v127_v63 = vld [vmem:[%s1726_s1 + $0x310] sm:$0xff]  ;;  %v128_v1 = vld [vmem:[%s1726_s1 + $0x318] sm:$0xff]  ;;  %v145_v4 = vld [vmem:[%s1726_s1 + $0x3a0] sm:$0xff]  ;;  %v1009_v6 = vpack.c.bf16 %v96_v62, %v95_v61  ;;  %v1011_v8 = vpack.c.bf16 %v114_v3, %v113_v2 }
  0x1d   :  { %966 = vmatpush3.bf16.msra.mxu0 %v965_v31  ;;  %v146_v5 = vld [vmem:[%s1726_s1 + $0x3a8] sm:$0xff]  ;;  %v1041_v7 = vpack.c.bf16 %v128_v1, %v127_v63  ;;  %v97_v9 = vld [vmem:[%s1726_s1 + $0x220] sm:$0xff]  ;;  %v115_v15 = vld [vmem:[%s1726_s1 + $0x2b0] sm:$0xff] }
  0x1e   :  { %968 = vmatprep.subr.bf16.mxu0 %v967_v35  ;;  %v98_v10 = vld [vmem:[%s1726_s1 + $0x228] sm:$0xff]  ;;  %v129_v11 = vld [vmem:[%s1726_s1 + $0x320] sm:$0xff]  ;;  %v1043_v12 = vpack.c.bf16 %v146_v5, %v145_v4  ;;  %v116_v16 = vld [vmem:[%s1726_s1 + $0x2b8] sm:$0xff] }
  0x1f   :  { %998 = vmatpush3.bf16.msra.mxu1 %v997_v34  ;;  %v130_v14 = vld [vmem:[%s1726_s1 + $0x328] sm:$0xff]  ;;  %v147_v17 = vld [vmem:[%s1726_s1 + $0x3b0] sm:$0xff]  ;;  %v148_v18 = vld [vmem:[%s1726_s1 + $0x3b8] sm:$0xff]  ;;  %v1013_v19 = vpack.c.bf16 %v98_v10, %v97_v9  ;;  %v1015_v22 = vpack.c.bf16 %v116_v16, %v115_v15 }
  0x20   :  { %1000 = vmatprep.subr.bf16.mxu1 %v999_v39  ;;  %v99_v20 = vld [vmem:[%s1726_s1 + $0x230] sm:$0xff]  ;;  %v1045_v21 = vpack.c.bf16 %v130_v14, %v129_v11  ;;  %v100_v23 = vld [vmem:[%s1726_s1 + $0x238] sm:$0xff]  ;;  %v1047_v26 = vpack.c.bf16 %v148_v18, %v147_v17  ;;  %v118_v28 = vld [vmem:[%s1726_s1 + $0x2c8] sm:$0xff] }
  0x21   :  { %970 = vmatpush3.bf16.msra.mxu0 %v969_v46  ;;  %v131_v24 = vld [vmem:[%s1726_s1 + $0x330] sm:$0xff]  ;;  %v132_v25 = vld [vmem:[%s1726_s1 + $0x338] sm:$0xff]  ;;  %v149_v29 = vld [vmem:[%s1726_s1 + $0x3c0] sm:$0xff] }
  0x22   :  { %1004 = vmatprep.subr.bf16.mxu0 %v1003_v48  ;;  %v150_v30 = vld [vmem:[%s1726_s1 + $0x3c8] sm:$0xff] }
  0x23   :  { %1002 = vmatpush3.bf16.msra.mxu1 %v1001_v47  ;;  %v28_v31 = vld [vmem:[%s1725_s0 + $0x8] sm:$0xff] }
  0x24   :  { %1036 = vmatprep.subr.bf16.mxu1 %v1035_v52  ;;  %273 = vmatmul.mubr.f32.vlgmr.msra.gmra.mrb[0].mxu0 %v173_v27  ;;  %v117_v27 = vld [vmem:[%s1726_s1 + $0x2c0] sm:$0xff] }
  0x25   :  { %1006 = vmatpush3.bf16.msra.mxu0 %v1005_v58 }
  0x26   :  { %343 = vmatmul.mubr.f32.vlgmr.msra.gmra.mrb[0].mxu1 %v180_v33  ;;  %1008 = vmatprep.subr.bf16.mxu0 %v1007_v60 }
  0x27   :  { %1038 = vmatpush3.bf16.msra.mxu1 %v1037_v59 }
  0x28   :  { %1040 = vmatprep.subr.bf16.mxu1 %v1039_v0 }
  0x29   :  { %1010 = vmatpush3.bf16.msra.mxu0 %v1009_v6 }
  0x2a   :  { %1012 = vmatprep.subr.bf16.mxu0 %v1011_v8 }
  0x2b   :  { %1042 = vmatpush3.bf16.msra.mxu1 %v1041_v7 }
  0x2c   :  { %1044 = vmatprep.subr.bf16.mxu1 %v1043_v12 }
  0x2d   :  { %12 = vsyncpa [#allocation3], 0  ;;  %1014 = vmatpush3.bf16.msra.mxu0 %v1013_v19  ;;  %v1017_v32 = vpack.c.bf16 %v100_v23, %v99_v20  ;;  %v1502_v33 = vrot.slane %v28_v31, %v1341_v13  ;;  %v183_v34 = vcombine.high %v28_v31, %v28_v31  ;;  %v1049_v35 = vpack.c.bf16 %v132_v25, %v131_v24  ;;  %v101_v37 = vld [vmem:[%s1726_s1 + $0x240] sm:$0xff]  ;;  %v102_v38 = vld [vmem:[%s1726_s1 + $0x248] sm:$0xff]  ;;  %s1150_s21 = smov [#allocation2]  }
  0x2e   :  { %1016 = vmatprep.subr.bf16.mxu0 %v1015_v22  ;;  %v1019_v36 = vpack.c.bf16 %v118_v28, %v117_v27  ;;  %v133_v39 = vld [vmem:[%s1726_s1 + $0x340] sm:$0xff]  ;;  %v1051_v40 = vpack.c.bf16 %v150_v30, %v149_v29  ;;  %v134_v41 = vld [vmem:[%s1726_s1 + $0x348] sm:$0xff]  ;;  %v119_v42 = vld [vmem:[%s1726_s1 + $0x2d0] sm:$0xff]  ;;  %v1021_v48 = vpack.c.bf16 %v102_v38, %v101_v37  ;;  %v1147_v22 = vmov 0.0|0.0   ;;  %s684_s22 = sshll.u32 %s1150_s21, 4  ;;  %s685_s22 = int_to_ptr.vmem [resolvable:$true] %s684_s22 }
  0x2f   :  { %1046 = vmatpush3.bf16.msra.mxu1 %v1045_v21  ;;  %v120_v43 = vld [vmem:[%s1726_s1 + $0x2d8] sm:$0xff]  ;;  %v198_v44 = vcombine.high %v1502_v33, %v1502_v33  ;;  %v197_v45 = vrot.slane %v183_v34, %v1341_v13  ;;  %v151_v46 = vld [vmem:[%s1726_s1 + $0x3d0] sm:$0xff]  ;;  %v1053_v50 = vpack.c.bf16 %v134_v41, %v133_v39  ;;  %v121_v56 = vld [vmem:[%s1726_s1 + $0x2e0] sm:$0xff]  ;;  %vm1148_vm0 = vmmov 0   ;;  %p1127_p1 = scmp.lt.s32.totalorder %s685_s22, %s685_s22 }
  0x30   :  { %1048 = vmatprep.subr.bf16.mxu1 %v1047_v26  ;;  %v152_v47 = vld [vmem:[%s1726_s1 + $0x3d8] sm:$0xff]  ;;  %v1023_v51 = vpack.c.bf16 %v120_v43, %v119_v42  ;;  %v103_v13 = vld [vmem:[%s1726_s1 + $0x250] sm:$0xff]  ;;  %v122_v57 = vld [vmem:[%s1726_s1 + $0x2e8] sm:$0xff]  ;;  %vm676_vm1 = vcmask 58368  }
  0x31   :  { %1018 = vmatpush3.bf16.msra.mxu0 %v1017_v32  ;;  %412 = vmatprep.mubr.f32.mxu0 %v198_v44  ;;  %v199_v49 = vcombine.high %v197_v45, %v197_v45  ;;  %v104_v52 = vld [vmem:[%s1726_s1 + $0x258] sm:$0xff]  ;;  %v135_v53 = vld [vmem:[%s1726_s1 + $0x350] sm:$0xff]  ;;  %v1055_v54 = vpack.c.bf16 %v152_v47, %v151_v46  ;;  %v153_v58 = vld [vmem:[%s1726_s1 + $0x3e0] sm:$0xff]  ;;  %v1027_v62 = vpack.c.bf16 %v122_v57, %v121_v56  ;;  %v1149_v44 = vmov 0.0  }
  0x32   :  { %1020 = vmatprep.subr.bf16.mxu0 %v1019_v36  ;;  %v136_v55 = vld [vmem:[%s1726_s1 + $0x358] sm:$0xff]  ;;  %v154_v59 = vld [vmem:[%s1726_s1 + $0x3e8] sm:$0xff]  ;;  %v1025_v60 = vpack.c.bf16 %v104_v52, %v103_v13  ;;  %v105_v63 = vld [vmem:[%s1726_s1 + $0x260] sm:$0xff] }
  0x33   :  { %1050 = vmatpush3.bf16.msra.mxu1 %v1049_v35  ;;  %482 = vmatprep.mubr.f32.mxu1 %v199_v49  ;;  %v1057_v61 = vpack.c.bf16 %v136_v55, %v135_v53  ;;  %v106_v0 = vld [vmem:[%s1726_s1 + $0x268] sm:$0xff]  ;;  %v137_v1 = vld [vmem:[%s1726_s1 + $0x360] sm:$0xff]  ;;  %v1059_v2 = vpack.c.bf16 %v154_v59, %v153_v58  ;;  %v123_v4 = vld [vmem:[%s1726_s1 + $0x2f0] sm:$0xff] }
  0x34   :  { %1052 = vmatprep.subr.bf16.mxu1 %v1051_v40  ;;  %v138_v3 = vld [vmem:[%s1726_s1 + $0x368] sm:$0xff]  ;;  %v124_v5 = vld [vmem:[%s1726_s1 + $0x2f8] sm:$0xff]  ;;  %v155_v6 = vld [vmem:[%s1726_s1 + $0x3f0] sm:$0xff]  ;;  %v1029_v8 = vpack.c.bf16 %v106_v0, %v105_v63 }
  0x35   :  { %1022 = vmatpush3.bf16.msra.mxu0 %v1021_v48  ;;  %v156_v7 = vld [vmem:[%s1726_s1 + $0x3f8] sm:$0xff]  ;;  %v1061_v9 = vpack.c.bf16 %v138_v3, %v137_v1  ;;  %v1031_v10 = vpack.c.bf16 %v124_v5, %v123_v4  ;;  %v107_v11 = vld [vmem:[%s1726_s1 + $0x270] sm:$0xff]  ;;  %v489_v19 = vld [vmem:[%s1728_s3] sm:$0xff] }
  0x36   :  { %1024 = vmatprep.subr.bf16.mxu0 %v1023_v51  ;;  %v108_v12 = vld [vmem:[%s1726_s1 + $0x278] sm:$0xff]  ;;  %v1063_v14 = vpack.c.bf16 %v156_v7, %v155_v6  ;;  %v139_v15 = vld [vmem:[%s1726_s1 + $0x370] sm:$0xff]  ;;  %v490_v20 = vld [vmem:[%s1728_s3 + $0x8] sm:$0xff] }
  0x37   :  { %1054 = vmatpush3.bf16.msra.mxu1 %v1053_v50  ;;  %v140_v16 = vld [vmem:[%s1726_s1 + $0x378] sm:$0xff]  ;;  %v1033_v17 = vpack.c.bf16 %v108_v12, %v107_v11  ;;  %v491_v21 = vld [vmem:[%s1728_s3 + $0x10] sm:$0xff]  ;;  %v1068_v23 = vpack.c.bf16 %v490_v20, %v489_v19  ;;  %v493_v26 = vld [vmem:[%s1728_s3 + $0x20] sm:$0xff] }
  0x38   :  { %1056 = vmatprep.subr.bf16.mxu1 %v1055_v54  ;;  %v1065_v18 = vpack.c.bf16 %v140_v16, %v139_v15  ;;  %v492_v24 = vld [vmem:[%s1728_s3 + $0x18] sm:$0xff]  ;;  %v494_v27 = vld [vmem:[%s1728_s3 + $0x28] sm:$0xff]  ;;  %v495_v29 = vld [vmem:[%s1728_s3 + $0x30] sm:$0xff] }
  0x39   :  { %1026 = vmatpush3.bf16.msra.mxu0 %v1025_v60  ;;  %v1071_v25 = vpack.c.bf16 %v492_v24, %v491_v21  ;;  %v1074_v28 = vpack.c.bf16 %v494_v27, %v493_v26  ;;  %v496_v30 = vld [vmem:[%s1728_s3 + $0x38] sm:$0xff]  ;;  %v497_v32 = vld [vmem:[%s1728_s3 + $0x40] sm:$0xff]  ;;  %v499_v35 = vld [vmem:[%s1728_s3 + $0x50] sm:$0xff] }
  0x3a   :  { %1028 = vmatprep.subr.bf16.mxu0 %v1027_v62  ;;  %v1077_v31 = vpack.c.bf16 %v496_v30, %v495_v29  ;;  %v500_v36 = vld [vmem:[%s1728_s3 + $0x58] sm:$0xff]  ;;  %v501_v38 = vld [vmem:[%s1728_s3 + $0x60] sm:$0xff]  ;;  %v502_v39 = vld [vmem:[%s1728_s3 + $0x68] sm:$0xff] }
  0x3b   :  { %1058 = vmatpush3.bf16.msra.mxu1 %v1057_v61  ;;  %v1083_v37 = vpack.c.bf16 %v500_v36, %v499_v35  ;;  %v1086_v40 = vpack.c.bf16 %v502_v39, %v501_v38  ;;  %v503_v41 = vld [vmem:[%s1728_s3 + $0x70] sm:$0xff]  ;;  %v504_v42 = vld [vmem:[%s1728_s3 + $0x78] sm:$0xff]  ;;  %v584_v46 = vld [vmem:[%s1730_s5 + $0x8] sm:$0xff] }
  0x3c   :  { %1060 = vmatprep.subr.bf16.mxu1 %v1059_v2  ;;  %v1089_v43 = vpack.c.bf16 %v504_v42, %v503_v41  ;;  %v585_v47 = vld [vmem:[%s1730_s5 + $0x10] sm:$0xff]  ;;  %v586_v49 = vld [vmem:[%s1730_s5 + $0x18] sm:$0xff]  ;;  %v587_v51 = vld [vmem:[%s1730_s5 + $0x20] sm:$0xff] }
  0x3d   :  { %1030 = vmatpush3.bf16.msra.mxu0 %v1029_v8  ;;  %v1095_v50 = vpack.c.bf16 %v586_v49, %v585_v47  ;;  %v588_v13 = vld [vmem:[%s1730_s5 + $0x28] sm:$0xff]  ;;  %v589_v53 = vld [vmem:[%s1730_s5 + $0x30] sm:$0xff]  ;;  %v590_v54 = vld [vmem:[%s1730_s5 + $0x38] sm:$0xff] }
  0x3e   :  { %1032 = vmatprep.subr.bf16.mxu0 %v1031_v10  ;;  %v1098_v52 = vpack.c.bf16 %v588_v13, %v587_v51  ;;  %v1101_v55 = vpack.c.bf16 %v590_v54, %v589_v53  ;;  %v591_v56 = vld [vmem:[%s1730_s5 + $0x40] sm:$0xff]  ;;  %v592_v57 = vld [vmem:[%s1730_s5 + $0x48] sm:$0xff]  ;;  %v593_v59 = vld [vmem:[%s1730_s5 + $0x50] sm:$0xff] }
  0x3f   :  { %1062 = vmatpush3.bf16.msra.mxu1 %v1061_v9  ;;  %v1104_v58 = vpack.c.bf16 %v592_v57, %v591_v56  ;;  %v594_v60 = vld [vmem:[%s1730_s5 + $0x58] sm:$0xff]  ;;  %v595_v62 = vld [vmem:[%s1730_s5 + $0x60] sm:$0xff]  ;;  %v596_v63 = vld [vmem:[%s1730_s5 + $0x68] sm:$0xff] }
  0x40   :  { %1064 = vmatprep.subr.bf16.mxu1 %v1063_v14  ;;  %v1107_v61 = vpack.c.bf16 %v594_v60, %v593_v59  ;;  %v1110_v0 = vpack.c.bf16 %v596_v63, %v595_v62  ;;  %v692_v2 = vld [vmem:[%s1727_s2] ss:$0 sm:$0xff]  ;;  %v597_v20 = vld [vmem:[%s1730_s5 + $0x70] sm:$0xff]  ;;  %v598_v21 = vld [vmem:[%s1730_s5 + $0x78] sm:$0xff] }
  0x41   :  { %1034 = vmatpush3.bf16.msra.mxu0 %v1033_v17 }
  0x42   :  { %1067 = vmatprep.subr.bf16.mxu0 %v1147_v22 }
  0x43   :  { %1066 = vmatpush3.bf16.msra.mxu1 %v1065_v18 }
  0x44   :  { %413 = vmatmul.mubr.f32.vlgmr.msra.gmra.mrb[2].mxu0 %v1502_v33  ;;  %1091 = vmatprep.subr.bf16.mxu1 %v1147_v22  ;;  %v498_v33 = vld [vmem:[%s1728_s3 + $0x48] sm:$0xff] }
  0x45   :  { %1069 = vmatpush3.bf16.msra.mxu0 %v1068_v23  ;;  %v1080_v34 = vpack.c.bf16 %v498_v33, %v497_v32  ;;  %901 = vmatprep.mubr.msk.f32.mxu0 %vm1148_vm0, %v1149_v44  ;;  %v693_v23 = vld [vmem:[%s1729_s4] ss:$0 sm:$0xff] }
  0x46   :  { %483 = vmatmul.mubr.f32.vlgmr.msra.gmra.mrb[2].mxu1 %v197_v45  ;;  %1070 = vmatprep.subr.bf16.mxu0 %v1147_v22  ;;  %v583_v45 = vld [vmem:[%s1730_s5] sm:$0xff]  ;;  %s1122_s5 = scalar_lea.vmem %s685_s22, 32 }
  0x47   :  { %936 = vmatprep.mubr.msk.f32.mxu1 %vm1148_vm0, %v1149_v44  ;;  %v1092_v48 = vpack.c.bf16 %v584_v46, %v583_v45  ;;  %p1123_p0 = scmp.ne.s32.totalorder %s685_s22, %s1122_s5  ;;  %p1128_p2 = scmp.lt.s32.totalorder %s1122_s5, %s1122_s5 }
  0x49   :  { %1072 = vmatpush3.bf16.msra.mxu0 %v1071_v25  ;;  %1093 = vmatpush3.bf16.msra.mxu1 %v1092_v48  ;;  %p1129_p3 = por %p1128_p2, %p1127_p1 }
  0x4a   :  { %1073 = vmatprep.subr.bf16.mxu0 %v1147_v22  ;;  %1094 = vmatprep.subr.bf16.mxu1 %v1147_v22 }
  0x4b   :  { %p1130_p4 = pnand %p1129_p3, %p1123_p0 }
  0x4d   :  { %1075 = vmatpush3.bf16.msra.mxu0 %v1074_v28  ;;  %1096 = vmatpush3.bf16.msra.mxu1 %v1095_v50  ;;  %v694_v28 = vld [vmem:[%s1731_s6] ss:$0 sm:$0xff] }
  0x4e   :  { %1076 = vmatprep.subr.bf16.mxu0 %v1147_v22  ;;  %1097 = vmatprep.subr.bf16.mxu1 %v1147_v22 }
  0x51   :  { %1078 = vmatpush3.bf16.msra.mxu0 %v1077_v31  ;;  %1099 = vmatpush3.bf16.msra.mxu1 %v1098_v52 }
  0x52   :  { %1079 = vmatprep.subr.bf16.mxu0 %v1147_v22  ;;  %1100 = vmatprep.subr.bf16.mxu1 %v1147_v22 }
  0x55   :  { %1081 = vmatpush3.bf16.msra.mxu0 %v1080_v34  ;;  %1102 = vmatpush3.bf16.msra.mxu1 %v1101_v55 }
  0x56   :  { %1082 = vmatprep.subr.bf16.mxu0 %v1147_v22  ;;  %1103 = vmatprep.subr.bf16.mxu1 %v1147_v22 }
  0x59   :  { %1084 = vmatpush3.bf16.msra.mxu0 %v1083_v37  ;;  %1105 = vmatpush3.bf16.msra.mxu1 %v1104_v58 }
  0x5a   :  { %1085 = vmatprep.subr.bf16.mxu0 %v1147_v22  ;;  %1106 = vmatprep.subr.bf16.mxu1 %v1147_v22 }
  0x5d   :  { %1087 = vmatpush3.bf16.msra.mxu0 %v1086_v40  ;;  %1108 = vmatpush3.bf16.msra.mxu1 %v1107_v61 }
  0x5e   :  { %1088 = vmatprep.subr.bf16.mxu0 %v1147_v22  ;;  %1109 = vmatprep.subr.bf16.mxu1 %v1147_v22 }
  0x61   :  { %1090 = vmatpush3.bf16.msra.mxu0 %v1089_v43  ;;  %1111 = vmatpush3.bf16.msra.mxu1 %v1110_v0 }
  0x62   :  { %1112 = vmatprep.subr.bf16.mxu1 %v1147_v22  ;;  %v1113_v22 = vpack.c.bf16 %v598_v21, %v597_v20 }
  0x65   :  { %1114 = vmatpush3.bf16.msra.mxu1 %v1113_v22 }
  0xf7   :  { %v727_v1 = vpop.f32.mrb[0].mxu0 }
  0xf8   :  { %v728_v3 = vpop.f32.mrb[1].mxu0 }
  0xf9   :  { %v762_v4 = vpop.f32.mrb[0].mxu1  ;;  %v729_v5 = vadd.f32 %v728_v3, %v727_v1 }
  0xfa   :  { %v763_v6 = vpop.f32.mrb[1].mxu1 }
  0xfb   :  { %v764_v7 = vadd.f32 %v763_v6, %v762_v4  ;;  %v275_v8 = vadd.f32 %v729_v5, %v692_v2 }
  0xfd   :  { %v345_v9 = vadd.f32 %v764_v7, %v275_v8 }
 0x117   :  { %v797_v10 = vpop.f32.mrb[2].mxu0 }
 0x118   :  { %v798_v11 = vpop.f32.mrb[3].mxu0 }
 0x119   :  { %v832_v12 = vpop.f32.mrb[2].mxu1  ;;  %v799_v14 = vadd.f32 %v798_v11, %v797_v10 }
 0x11a   :  { %v833_v15 = vpop.f32.mrb[3].mxu1 }
 0x11b   :  { %v834_v16 = vadd.f32 %v833_v15, %v832_v12  ;;  %v415_v17 = vadd.f32 %v799_v14, %v345_v9 }
 0x11d   :  { %v485_v18 = vadd.f32 %v834_v16, %v415_v17 }
 0x11f   :  { %v488_v19 = vmax.f32 %v485_v18, 0.0 }
 0x121   :  { %902 = vmatmul.mubr.f32.vlgmr.msra.gmra.mrb[4].mxu0 %v488_v19 }
 0x1f4   :  { %v578_v24 = vpop.f32.mrb[4].mxu0 }
 0x1f5   :  { %v579_v25 = vadd.f32 %v693_v23, %v578_v24  ;;  %v903_v26 = vpop.f32.mrb[5].mxu0 }
 0x1f7   :  { %v582_v27 = vmax.f32 %v579_v25, 0.0 }
 0x1f9   :  { %937 = vmatmul.mubr.f32.vlgmr.msra.gmra.mrb[4].mxu1 %v582_v27 }
 0x2cc   :  { %v672_v29 = vpop.f32.mrb[4].mxu1 }
 0x2cd   :  { %v673_v30 = vadd.f32 %v694_v28, %v672_v29  ;;  %v938_v31 = vpop.f32.mrb[5].mxu1 }
 0x2cf   :  { %677 = vst.msk [vmem:[#allocation2] sm:$0x3] %vm676_vm1, %v673_v30 }
 0x2d0   :  { %1133 = shalt.err (!%p1130_p4)
}
 0x2d1   :  { %s1134_s24 = scalar_lea.hbm %s1732_s7, 32 }
 0x2d2   :  { %p1135_p5 = scmp.ne.s32.totalorder %s1732_s7, %s1134_s24  ;;  %p1138_p6 = scmp.lt.u32.totalorder %s1134_s24, %s1732_s7 }
 0x2d4   :  { %p1140_p7 = pnand %p1138_p6, %p1135_p5 }
 0x2d6   :  { %1143 = shalt.err (!%p1140_p7)
}
 0x2d7   :  { %687 = dma.vmem_to_hbm [thread:$0]  %s685_s22, 32, %s1732_s7, [#allocation3]  }
 0x2d8   :  { %1144 = dma.done.wait [#allocation3], 32  }
 0x2d9   :  { %1145 = vsyncadd [#allocation3], 4294967264 }
 0x2da   :  { %691 = vsyncpa [#allocation3], 1 }

</bundles_post_ra>
